<compile_context>
chip_gen: v7x
topology: tpu7x:2x2x1
jax: 0.10.0
libtpu: 0.0.40
codegen_flags: <defaults>
</compile_context>

<pallas_src>
import functools

import numpy as np
import jax
import jax.numpy as jnp
from jax import lax
from jax.experimental import pallas as pl
from jax.experimental.pallas import tpu as pltpu

DT = 0.001
CONV_FACTOR = 100.0   # conv_factor default from __init__
PI = float(np.pi)

_CHUNK_MAX = 256      # rollout steps per grid chunk == sin/cos resync period
_UNROLL = 4           # inner-loop unroll factor


def _softplus(x):
    # numerically stable softplus; matches F.softplus for moderate inputs
    return jnp.log1p(jnp.exp(-jnp.abs(x))) + jnp.maximum(x, 0.0)


def _rk4(amp, y, dydt):
    """One step of the module's rk4_step (dydt gets RK4, y gets forward Euler)."""
    def deq(y_, d_):
        return CONV_FACTOR * (CONV_FACTOR / 4.0 * (amp - y_) - d_)

    k1 = DT * deq(y, dydt)
    k2 = DT * deq(y + 0.5 * dydt * DT, dydt + 0.5 * k1)
    k3 = DT * deq(y + 0.5 * dydt * DT, dydt + 0.5 * k2)
    k4 = DT * deq(y + dydt * DT, dydt + k3)
    dydt_new = dydt + (k1 + 2.0 * k2 + 2.0 * k3 + k4) / 6.0
    y_new = y + dydt * DT
    return y_new, dydt_new


def _round_up(x, m):
    return (x + m - 1) // m * m


def _pack_params(frequencies, amplitudes, phases, y_state, dydt_state, dt_step=DT):
    """Pack everything lane-dense into one (8,128) f32 slab.
    rows: 0=freq_raw 1=amp_raw 2=phase_raw 3=y 4=dydt 5=dt (lane-broadcast)."""
    f32 = jnp.float32
    N = frequencies.shape[0]
    rows = jnp.stack([frequencies, amplitudes, phases, y_state, dydt_state]).astype(f32)
    slab = jnp.zeros((8, 128), f32)
    slab = slab.at[:5, :N].set(rows)
    slab = slab.at[5, :].set(jnp.asarray(dt_step, f32))
    return slab


# ---------------------------------------------------------------------------
# Single-step kernel (one MyActor.forward call), state slab aliased in/out.
#   t_ref    : (8, 1)    padded batch times
#   par_ref  : (8, 128)  packed parameter/state slab (see _pack_params)
#   mu_ref   : (8, 128)  rows 0..B-1 = mu (padded batch)
#   newp_ref : (8, 128)  updated slab (rows 3/4 advanced) - aliased with par_ref
# ---------------------------------------------------------------------------
def _step_kernel(t_ref, par_ref, mu_ref, newp_ref):
    P = par_ref[...]                       # one vreg
    f = _softplus(P[0:1, :])               # (1, 128)
    amp = P[1:2, :]
    p = _softplus(P[2:3, :])
    y = P[3:4, :]
    dydt = P[4:5, :]

    y_new, d_new = _rk4(amp, y, dydt)

    t = t_ref[...]                                       # (8, 1)
    mu_ref[...] = y_new * jnp.sin(2.0 * PI * f * t + p)  # lane-dense full-vreg store
    newp_ref[...] = jnp.concatenate([P[0:3, :], y_new, d_new, P[5:8, :]], axis=0)


def _step_call(t_col, params):
    f32 = jnp.float32
    return pl.pallas_call(
        _step_kernel,
        out_shape=(jax.ShapeDtypeStruct((8, 128), f32),
                   jax.ShapeDtypeStruct((8, 128), f32)),
        input_output_aliases={1: 1},       # params slab reused in place
    )(t_col, params)


@jax.jit
def my_actor_forward(t, frequencies, amplitudes, phases, y_state, dydt_state, std_scalar):
    """Single forward step.  Returns (mu[B,N], std[B,N], y_new[N], dydt_new[N])."""
    B = t.shape[0]
    N = frequencies.shape[0]
    assert B <= 8 and N <= 128
    f32 = jnp.float32

    params = _pack_params(frequencies, amplitudes, phases, y_state, dydt_state)
    t_col = jnp.zeros((8, 1), f32).at[:B, 0].set(t.astype(f32))

    mu_slab, new_params = _step_call(t_col, params)
    mu = mu_slab[:B, :N]
    y_new = new_params[3, :N]
    dydt_new = new_params[4, :N]
    std = jnp.full((B, N), std_scalar, f32)   # constant broadcast; no kernel work
    return mu, std, y_new, dydt_new


@jax.jit
def my_actor_forward_chained(t_steps, frequencies, amplitudes, phases,
                             y_state, dydt_state, std_scalar):
    """K sequential forward() calls carrying the packed state slab between the
    aliased pallas_calls (no per-step re-packing).  t_steps: (K, B)."""
    K, B = t_steps.shape
    N = frequencies.shape[0]
    assert B <= 8 and N <= 128
    f32 = jnp.float32

    params = _pack_params(frequencies, amplitudes, phases, y_state, dydt_state)
    mus = []
    for k in range(K):
        t_col = jnp.zeros((8, 1), f32).at[:B, 0].set(t_steps[k].astype(f32))
        mu_slab, params = _step_call(t_col, params)
        mus.append(mu_slab[:B, :N])
    mu = jnp.stack(mus)
    std = jnp.full((K, B, N), std_scalar, f32)
    return mu, std, params[3, :N], params[4, :N]


# ---------------------------------------------------------------------------
# Rollout kernel: T sequential forward() steps, chunked over a grid.
# Per chunk:
#   - exact sin/cos resync of the oscillator phase (bounds recurrence drift)
#   - CHUNK unrolled steps; per step: RK4 (full-vreg VPU), angle-addition
#     rotation of (sin, cos) (VPU), one unmasked (8,128) store.
# (y, dydt) carried across chunks in VMEM scratch; grid axis is "arbitrary".
# ---------------------------------------------------------------------------
def _rollout_kernel(t_ref, par_ref, mu_ref, state_ref, y_scr, d_scr,
                    *, chunk, n_steps, unroll):
    c = pl.program_id(0)
    P = par_ref[...]                               # (8, 128)

    f = _softplus(P[0:1, :])                       # (1, 128)
    p = _softplus(P[2:3, :])
    w = 2.0 * PI * f
    dt_row = P[5:6, :]                             # dt, lane-broadcast
    dtheta = w * dt_row                            # per-step phase increment

    # exact phase at the first step of this chunk: theta = w*(t0 + s0*dt) + p
    s0 = (c * chunk).astype(jnp.float32)
    theta0 = w * t_ref[...] + p + s0 * dtheta      # (8, 128)
    sin_t = jnp.sin(theta0)
    cos_t = jnp.cos(theta0)

    # loop-invariant full-vreg broadcasts, hoisted out of the step loop
    sin_d = jnp.broadcast_to(jnp.sin(dtheta), (8, 128))
    cos_d = jnp.broadcast_to(jnp.cos(dtheta), (8, 128))
    amp8 = jnp.broadcast_to(P[1:2, :], (8, 128))

    @pl.when(c == 0)
    def _():
        y_scr[...] = jnp.broadcast_to(P[3:4, :], (8, 128))
        d_scr[...] = jnp.broadcast_to(P[4:5, :], (8, 128))

    def step(sl, carry):
        y, d, s_t, c_t = carry
        y_new, d_new = _rk4(amp8, y, d)
        row = pl.multiple_of(sl * 8, 8)
        mu_ref[pl.ds(row, 8), :] = y_new * s_t     # aligned unmasked (8,128) store

        # angle-addition recurrence: theta += dtheta  (VPU only, no EUP sin)
        s_next = s_t * cos_d + c_t * sin_d
        c_next = c_t * cos_d - s_t * sin_d

        @pl.when(c * chunk + sl == n_steps - 1)    # snapshot final state
        def _():
            state_ref[...] = jnp.concatenate(
                [y_new[0:1, :], d_new[0:1, :], jnp.zeros((6, 128), jnp.float32)],
                axis=0)

        return (y_new, d_new, s_next, c_next)

    y, d, _, _ = lax.fori_loop(0, chunk, step,
                               (y_scr[...], d_scr[...], sin_t, cos_t),
                               unroll=unroll)
    y_scr[...] = y
    d_scr[...] = d


@functools.partial(jax.jit, static_argnames=("num_steps",))
def my_actor_rollout(t0, dt_step, frequencies, amplitudes, phases,
                     y_state, dydt_state, std_scalar, num_steps):
    """num_steps sequential forward() calls with t_s = t0 + s*dt_step.
    Returns (mu[T,B,N], std[T,B,N], y_final[N], dydt_final[N])."""
    T = int(num_steps)
    B = t0.shape[0]
    N = frequencies.shape[0]
    assert B <= 8 and N <= 128
    f32 = jnp.float32

    chunk = min(_CHUNK_MAX, _round_up(T, _UNROLL))
    n_chunks = pl.cdiv(T, chunk)
    t_pad = n_chunks * chunk

    params = _pack_params(frequencies, amplitudes, phases, y_state, dydt_state, dt_step)
    t_col = jnp.zeros((8, 1), f32).at[:B, 0].set(t0.astype(f32))

    kernel = functools.partial(_rollout_kernel, chunk=chunk, n_steps=T, unroll=_UNROLL)

    mu_out, state_out = pl.pallas_call(
        kernel,
        out_shape=(jax.ShapeDtypeStruct((8 * t_pad, 128), f32),
                   jax.ShapeDtypeStruct((8, 128), f32)),
        grid_spec=pltpu.PrefetchScalarGridSpec(
            num_scalar_prefetch=0,
            grid=(n_chunks,),
            in_specs=[pl.BlockSpec((8, 1), lambda cidx: (0, 0)),
                      pl.BlockSpec((8, 128), lambda cidx: (0, 0))],
            out_specs=[pl.BlockSpec((8 * chunk, 128), lambda cidx: (cidx, 0)),
                       pl.BlockSpec((8, 128), lambda cidx: (0, 0))],
            scratch_shapes=[pltpu.VMEM((8, 128), f32),     # y carry
                            pltpu.VMEM((8, 128), f32)]),   # dydt carry
        compiler_params=pltpu.CompilerParams(
            dimension_semantics=("arbitrary",)),
    )(t_col, params)

    mu = mu_out[: 8 * T, :].reshape(T, 8, 128)[:, :B, :N]
    y_final = state_out[0, :N]
    dydt_final = state_out[1, :N]
    std = jnp.full((T, B, N), std_scalar, f32)
    return mu, std, y_final, dydt_final


# ---------------------------------------------------------------------------
# Pure-JAX references
# ---------------------------------------------------------------------------
def _reference(t, frequencies, amplitudes, phases, y, dydt, std_scalar):
    f = jax.nn.softplus(frequencies)
    p = jax.nn.softplus(phases)
    y_new, dydt_new = _rk4(amplitudes, y, dydt)
    mu = y_new[None, :] * jnp.sin(2 * PI * f[None, :] * t[:, None] + p[None, :])
    std = jnp.ones_like(mu) * std_scalar
    return mu, std, y_new, dydt_new


def _reference_rollout(t_seq, frequencies, amplitudes, phases, y, dydt, std_scalar):
    def body(carry, t_b):
        y_, d_ = carry
        mu, _, y_new, d_new = _reference(
            t_b, frequencies, amplitudes, phases, y_, d_, std_scalar)
        return (y_new, d_new), mu
    (yT, dT), mus = lax.scan(body, (y, dydt), t_seq)
    return mus, yT, dT


if __name__ == "__main__":
    # num_actuators = 5 (implied by self.range having 5 entries)
    B, N = 2, 5
    key = jax.random.PRNGKey(0)
    k1, k2, k3, k4, k5, k6 = jax.random.split(key, 6)

    frequencies = jax.random.normal(k1, (N,), jnp.float32)
    amplitudes = jax.random.normal(k2, (N,), jnp.float32)
    phases = jax.random.normal(k3, (N,), jnp.float32)
    y_state = 0.1 * jax.random.normal(k4, (N,), jnp.float32)
    dydt_state = 0.1 * jax.random.normal(k5, (N,), jnp.float32)

    obs = jax.random.normal(k6, (B, 24), jnp.float32)  # unused by forward (signature parity)
    t = jnp.arange(B, dtype=jnp.float32) * 0.01
    std_scalar = 0.5

    # --- single forward step (matches one MyActor.forward call) ---
    mu, std, y_new, dydt_new = my_actor_forward(
        t, frequencies, amplitudes, phases, y_state, dydt_state, std_scalar)
    jax.block_until_ready((mu, std, y_new, dydt_new))

    mu_r, std_r, y_r, d_r = _reference(
        t, frequencies, amplitudes, phases, y_state, dydt_state, std_scalar)
    assert np.allclose(mu, mu_r, atol=1e-5)
    assert np.allclose(std, std_r, atol=1e-6)
    assert np.allclose(y_new, y_r, atol=1e-6)
    assert np.allclose(dydt_new, d_r, atol=1e-4)

    # --- chained single steps: aliased packed state slab, no per-step repack ---
    K = 3
    t_steps = t[None, :] + jnp.arange(K, dtype=jnp.float32)[:, None] * DT    # (K, B)
    mu_c, std_c, y_c, d_c = my_actor_forward_chained(
        t_steps, frequencies, amplitudes, phases, y_state, dydt_state, std_scalar)
    jax.block_until_ready((mu_c, std_c, y_c, d_c))

    mus_cr, y_cr, d_cr = _reference_rollout(
        t_steps, frequencies, amplitudes, phases, y_state, dydt_state, std_scalar)
    assert np.allclose(mu_c, mus_cr, rtol=1e-4, atol=1e-4)
    assert np.allclose(y_c, y_cr, atol=1e-5)
    assert np.allclose(d_c, d_cr, atol=1e-3)

    # --- fused rollout: 100 sequential forward steps in ONE pallas_call ---
    T = 100
    mu_s, std_s, yT, dT_ = my_actor_rollout(
        t, DT, frequencies, amplitudes, phases, y_state, dydt_state, std_scalar,
        num_steps=T)
    jax.block_until_ready((mu_s, std_s, yT, dT_))

    t_seq = t[None, :] + jnp.arange(T, dtype=jnp.float32)[:, None] * DT      # (T, B)
    mus_r, yT_r, dT_r = _reference_rollout(
        t_seq, frequencies, amplitudes, phases, y_state, dydt_state, std_scalar)
    assert np.allclose(mu_s, mus_r, rtol=1e-3, atol=1e-3)
    assert np.allclose(yT, yT_r, rtol=1e-3, atol=1e-3)
    assert np.allclose(dT_, dT_r, rtol=1e-3, atol=1e-2)

    print("KERNEL_OK")
</pallas_src>

<mosaic_0001>
module attributes {stable_mosaic.version = 11 : i64} {
  func.func @_step_kernel(%arg0: memref<8x1xf32, #tpu.memory_space<vmem>>, %arg1: memref<8x128xf32, #tpu.memory_space<vmem>>, %arg2: memref<8x128xf32, #tpu.memory_space<vmem>>, %arg3: memref<8x128xf32, #tpu.memory_space<vmem>>) attributes {dimension_semantics = [], scalar_prefetch = 0 : i64, scratch_operands = 0 : i64, tpu.core_type = #tpu.core_type<tc>} {
    %c0 = arith.constant 0 : index
    %c0_0 = arith.constant 0 : index
    %0 = vector.load %arg1[%c0, %c0_0] : memref<8x128xf32, #tpu.memory_space<vmem>>, vector<8x128xf32>
    %1 = vector.extract_strided_slice %0 {offsets = [0, 0], sizes = [1, 128], strides = [1, 1]} : vector<8x128xf32> to vector<1x128xf32>
    %2 = math.absf %1 : vector<1x128xf32>
    %cst = arith.constant 0.000000e+00 : f32
    %3 = vector.broadcast %cst : f32 to vector<1x128xf32>
    %4 = arith.subf %3, %2 : vector<1x128xf32>
    %5 = math.exp %4 : vector<1x128xf32>
    %6 = math.log1p %5 : vector<1x128xf32>
    %cst_1 = arith.constant 0.000000e+00 : f32
    %7 = vector.broadcast %cst_1 : f32 to vector<1x128xf32>
    %8 = arith.maximumf %1, %7 : vector<1x128xf32>
    %9 = arith.addf %6, %8 : vector<1x128xf32>
    %10 = vector.extract_strided_slice %0 {offsets = [1, 0], sizes = [1, 128], strides = [1, 1]} : vector<8x128xf32> to vector<1x128xf32>
    %11 = vector.extract_strided_slice %0 {offsets = [2, 0], sizes = [1, 128], strides = [1, 1]} : vector<8x128xf32> to vector<1x128xf32>
    %12 = math.absf %11 : vector<1x128xf32>
    %cst_2 = arith.constant 0.000000e+00 : f32
    %13 = vector.broadcast %cst_2 : f32 to vector<1x128xf32>
    %14 = arith.subf %13, %12 : vector<1x128xf32>
    %15 = math.exp %14 : vector<1x128xf32>
    %16 = math.log1p %15 : vector<1x128xf32>
    %cst_3 = arith.constant 0.000000e+00 : f32
    %17 = vector.broadcast %cst_3 : f32 to vector<1x128xf32>
    %18 = arith.maximumf %11, %17 : vector<1x128xf32>
    %19 = arith.addf %16, %18 : vector<1x128xf32>
    %20 = vector.extract_strided_slice %0 {offsets = [3, 0], sizes = [1, 128], strides = [1, 1]} : vector<8x128xf32> to vector<1x128xf32>
    %21 = vector.extract_strided_slice %0 {offsets = [4, 0], sizes = [1, 128], strides = [1, 1]} : vector<8x128xf32> to vector<1x128xf32>
    %22 = arith.subf %10, %20 : vector<1x128xf32>
    %cst_4 = arith.constant 2.500000e+01 : f32
    %23 = vector.broadcast %cst_4 : f32 to vector<1x128xf32>
    %24 = arith.mulf %23, %22 : vector<1x128xf32>
    %25 = arith.subf %24, %21 : vector<1x128xf32>
    %cst_5 = arith.constant 1.000000e+02 : f32
    %26 = vector.broadcast %cst_5 : f32 to vector<1x128xf32>
    %27 = arith.mulf %26, %25 : vector<1x128xf32>
    %cst_6 = arith.constant 1.000000e-03 : f32
    %28 = vector.broadcast %cst_6 : f32 to vector<1x128xf32>
    %29 = arith.mulf %28, %27 : vector<1x128xf32>
    %cst_7 = arith.constant 5.000000e-01 : f32
    %30 = vector.broadcast %cst_7 : f32 to vector<1x128xf32>
    %31 = arith.mulf %30, %21 : vector<1x128xf32>
    %cst_8 = arith.constant 1.000000e-03 : f32
    %32 = vector.broadcast %cst_8 : f32 to vector<1x128xf32>
    %33 = arith.mulf %31, %32 : vector<1x128xf32>
    %34 = arith.addf %20, %33 : vector<1x128xf32>
    %cst_9 = arith.constant 5.000000e-01 : f32
    %35 = vector.broadcast %cst_9 : f32 to vector<1x128xf32>
    %36 = arith.mulf %35, %29 : vector<1x128xf32>
    %37 = arith.addf %21, %36 : vector<1x128xf32>
    %38 = arith.subf %10, %34 : vector<1x128xf32>
    %cst_10 = arith.constant 2.500000e+01 : f32
    %39 = vector.broadcast %cst_10 : f32 to vector<1x128xf32>
    %40 = arith.mulf %39, %38 : vector<1x128xf32>
    %41 = arith.subf %40, %37 : vector<1x128xf32>
    %cst_11 = arith.constant 1.000000e+02 : f32
    %42 = vector.broadcast %cst_11 : f32 to vector<1x128xf32>
    %43 = arith.mulf %42, %41 : vector<1x128xf32>
    %cst_12 = arith.constant 1.000000e-03 : f32
    %44 = vector.broadcast %cst_12 : f32 to vector<1x128xf32>
    %45 = arith.mulf %44, %43 : vector<1x128xf32>
    %cst_13 = arith.constant 5.000000e-01 : f32
    %46 = vector.broadcast %cst_13 : f32 to vector<1x128xf32>
    %47 = arith.mulf %46, %21 : vector<1x128xf32>
    %cst_14 = arith.constant 1.000000e-03 : f32
    %48 = vector.broadcast %cst_14 : f32 to vector<1x128xf32>
    %49 = arith.mulf %47, %48 : vector<1x128xf32>
    %50 = arith.addf %20, %49 : vector<1x128xf32>
    %cst_15 = arith.constant 5.000000e-01 : f32
    %51 = vector.broadcast %cst_15 : f32 to vector<1x128xf32>
    %52 = arith.mulf %51, %45 : vector<1x128xf32>
    %53 = arith.addf %21, %52 : vector<1x128xf32>
    %54 = arith.subf %10, %50 : vector<1x128xf32>
    %cst_16 = arith.constant 2.500000e+01 : f32
    %55 = vector.broadcast %cst_16 : f32 to vector<1x128xf32>
    %56 = arith.mulf %55, %54 : vector<1x128xf32>
    %57 = arith.subf %56, %53 : vector<1x128xf32>
    %cst_17 = arith.constant 1.000000e+02 : f32
    %58 = vector.broadcast %cst_17 : f32 to vector<1x128xf32>
    %59 = arith.mulf %58, %57 : vector<1x128xf32>
    %cst_18 = arith.constant 1.000000e-03 : f32
    %60 = vector.broadcast %cst_18 : f32 to vector<1x128xf32>
    %61 = arith.mulf %60, %59 : vector<1x128xf32>
    %cst_19 = arith.constant 1.000000e-03 : f32
    %62 = vector.broadcast %cst_19 : f32 to vector<1x128xf32>
    %63 = arith.mulf %21, %62 : vector<1x128xf32>
    %64 = arith.addf %20, %63 : vector<1x128xf32>
    %65 = arith.addf %21, %61 : vector<1x128xf32>
    %66 = arith.subf %10, %64 : vector<1x128xf32>
    %cst_20 = arith.constant 2.500000e+01 : f32
    %67 = vector.broadcast %cst_20 : f32 to vector<1x128xf32>
    %68 = arith.mulf %67, %66 : vector<1x128xf32>
    %69 = arith.subf %68, %65 : vector<1x128xf32>
    %cst_21 = arith.constant 1.000000e+02 : f32
    %70 = vector.broadcast %cst_21 : f32 to vector<1x128xf32>
    %71 = arith.mulf %70, %69 : vector<1x128xf32>
    %cst_22 = arith.constant 1.000000e-03 : f32
    %72 = vector.broadcast %cst_22 : f32 to vector<1x128xf32>
    %73 = arith.mulf %72, %71 : vector<1x128xf32>
    %cst_23 = arith.constant 2.000000e+00 : f32
    %74 = vector.broadcast %cst_23 : f32 to vector<1x128xf32>
    %75 = arith.mulf %74, %45 : vector<1x128xf32>
    %76 = arith.addf %29, %75 : vector<1x128xf32>
    %cst_24 = arith.constant 2.000000e+00 : f32
    %77 = vector.broadcast %cst_24 : f32 to vector<1x128xf32>
    %78 = arith.mulf %77, %61 : vector<1x128xf32>
    %79 = arith.addf %76, %78 : vector<1x128xf32>
    %80 = arith.addf %79, %73 : vector<1x128xf32>
    %cst_25 = arith.constant 6.000000e+00 : f32
    %81 = vector.broadcast %cst_25 : f32 to vector<1x128xf32>
    %82 = arith.divf %80, %81 : vector<1x128xf32>
    %83 = arith.addf %21, %82 : vector<1x128xf32>
    %cst_26 = arith.constant 1.000000e-03 : f32
    %84 = vector.broadcast %cst_26 : f32 to vector<1x128xf32>
    %85 = arith.mulf %21, %84 : vector<1x128xf32>
    %86 = arith.addf %20, %85 : vector<1x128xf32>
    %c0_27 = arith.constant 0 : index
    %c0_28 = arith.constant 0 : index
    %87 = vector.load %arg0[%c0_27, %c0_28] : memref<8x1xf32, #tpu.memory_space<vmem>>, vector<8x1xf32>
    %cst_29 = arith.constant 6.28318548 : f32
    %88 = vector.broadcast %cst_29 : f32 to vector<1x128xf32>
    %89 = arith.mulf %88, %9 : vector<1x128xf32>
    %90 = vector.broadcast %89 : vector<1x128xf32> to vector<8x128xf32>
    %91 = vector.broadcast %87 : vector<8x1xf32> to vector<8x128xf32>
    %92 = arith.mulf %90, %91 : vector<8x128xf32>
    %93 = vector.broadcast %19 : vector<1x128xf32> to vector<8x128xf32>
    %94 = arith.addf %92, %93 : vector<8x128xf32>
    %95 = math.sin %94 : vector<8x128xf32>
    %96 = vector.broadcast %86 : vector<1x128xf32> to vector<8x128xf32>
    %97 = arith.mulf %96, %95 : vector<8x128xf32>
    %c0_30 = arith.constant 0 : index
    %c0_31 = arith.constant 0 : index
    %98 = vector.load %arg2[%c0_30, %c0_31] : memref<8x128xf32, #tpu.memory_space<vmem>>, vector<8x128xf32>
    tpu.vector_store %arg2[%c0_30, %c0_31], %97 {strides = array<i32>} : memref<8x128xf32, #tpu.memory_space<vmem>>, vector<8x128xf32>,
    %99 = vector.extract_strided_slice %0 {offsets = [0, 0], sizes = [3, 128], strides = [1, 1]} : vector<8x128xf32> to vector<3x128xf32>
    %100 = vector.extract_strided_slice %0 {offsets = [5, 0], sizes = [3, 128], strides = [1, 1]} : vector<8x128xf32> to vector<3x128xf32>
    %101 = tpu.concatenate %99, %86, %83, %100 in 0 : vector<3x128xf32>, vector<1x128xf32>, vector<1x128xf32>, vector<3x128xf32> -> vector<8x128xf32>
    %c0_32 = arith.constant 0 : index
    %c0_33 = arith.constant 0 : index
    %102 = vector.load %arg3[%c0_32, %c0_33] : memref<8x128xf32, #tpu.memory_space<vmem>>, vector<8x128xf32>
    tpu.vector_store %arg3[%c0_32, %c0_33], %101 {strides = array<i32>} : memref<8x128xf32, #tpu.memory_space<vmem>>, vector<8x128xf32>,
    return
  }
}

</mosaic_0001>

<bundles_post_ra>
// kernel: my_actor_forward.1
= control target key start
LH: loop header
LB: loop body
LE: loop exit
PB: predicated region body
PF: predicated region fallthrough
CT: control target
= control target key end

     0   :  { %v269_v0 = vmov 0   ;;  %vm230_vm0 = vcmask 1042432   ;;  %vm232_vm1 = vcmask 1043456   ;;  %vm234_vm2 = vcmask 1044480   ;;  %s358_s0 = inlined_call_operand.vmem [shape: f32[8,1], index: 0, kind: input, shape index: {}]   ;;  %s359_s1 = inlined_call_operand.vmem [shape: f32[8,128], index: 1, kind: input, shape index: {}, may-alias: {1,3}]   ;;  %s360_s3 = inlined_call_operand.vmem [shape: f32[8,128], index: 3, kind: output, shape index: {1}, may-alias: {1,3}]   ;;  %s361_s2 = inlined_call_operand.vmem [shape: f32[8,128], index: 2, kind: output, shape index: {0}]  }
   0x1   :  { %260 = vset.pattern.permute.xlu0 %v269_v0  ;;  %v103_v1 = vld [vmem:[%s358_s0] sm:$0xff] }
   0x2   :  { %v302_v2 = vld [vmem:[%s359_s1] sm:$0xff]  ;;  %111 = vperm.xlu0 %260, %v103_v1  }
   0x3   :  { %v30_v3 = vrot.slane %v302_v2, 2  ;;  %v39_v4 = vmul.f32 0.5, %v302_v2  ;;  %v34_v6 = vrot.slane %v302_v2, 3  ;;  %v72_v29 = vmul.f32 0.001, %v302_v2 }
   0x4   :  { %v14_v45 = vand.u32 2147483647, %v302_v2  ;;  %v27_v1 = vmax.f32 %v302_v2, 0.0 }
   0x5   :  { %v32_v5 = vsub.f32 %v302_v2, %v30_v3  ;;  %v40_v7 = vmul.f32 0.001, %v39_v4  ;;  %v74_v31 = vrot.slane %v72_v29, 1  ;;  %v105_v3 = vlaneseq }
   0x6   :  { %v15_v48 = vsub.f32 0.0, %v14_v45  ;;  %v272_v29 = vmov 2131351028  }
   0x7   :  { %v33_v8 = vmul.f32 25.0, %v32_v5  ;;  %v42_v9 = vrot.slane %v40_v7, 1  ;;  %v314_v33 = vadd.f32 %v74_v31, %v302_v2 }
   0x8   :  { %v16_v50 = vmul.f32 1.442695, %v15_v48 }
   0x9   :  { %v36_v10 = vsub.f32 %v33_v8, %v34_v6  ;;  %v44_v11 = vadd.f32 %v42_v9, %v302_v2  ;;  %v82_v35 = vrot.slane %v314_v33, 2  ;;  %v231_v54 = vsel %vm230_vm0, %v302_v2, %v314_v33 }
   0xa   :  { %261 = vpow2.f32 %v16_v50  ;;  %v328_v6 = vshrl.u32 %v105_v3, 7 }
   0xb   :  { %v37_v12 = vmul.f32 100.0, %v36_v10  ;;  %v51_v13 = vrot.slane %v44_v11, 2  ;;  %v84_v37 = vsub.f32 %v302_v2, %v82_v35 }
   0xc   :  { %v107_v8 = vsub.s32 0, %v328_v6  ;;  %v117_v9 = vsub.s32 2, %v328_v6 }
   0xd   :  { %v38_v14 = vmul.f32 0.001, %v37_v12  ;;  %v53_v16 = vsub.f32 %v302_v2, %v51_v13  ;;  %v85_v38 = vmul.f32 25.0, %v84_v37 }
   0xf   :  { %v45_v15 = vmul.f32 0.5, %v38_v14  ;;  %v54_v19 = vmul.f32 25.0, %v53_v16 }
  0x11   :  { %v47_v17 = vrot.slane %v45_v15, 5 }
  0x13   :  { %v49_v18 = vadd.f32 %v47_v17, %v302_v2 }
  0x14   :  { %v262_v57 = vpop.eup %261 }
  0x15   :  { %v56_v20 = vrot.slane %v49_v18, 3  ;;  %v18_v58 = vadd.f32 1.0, %v262_v57  ;;  %v21_v59 = vmul.f32 -0.5, %v262_v57  ;;  %v24_v62 = vand.u32 2147483647, %v262_v57 }
  0x17   :  { %v58_v21 = vsub.f32 %v54_v19, %v56_v20  ;;  %263 = vlog2.f32 %v18_v58  ;;  %v22_v60 = vadd.f32 1.0, %v21_v59  ;;  %vm25_vm3 = vcmp.lt.f32.partialorder %v24_v62, 0.0004427343 }
  0x19   :  { %v59_v22 = vmul.f32 100.0, %v58_v21  ;;  %v23_v0 = vmul.f32 %v262_v57, %v22_v60 }
  0x1b   :  { %v60_v23 = vmul.f32 0.001, %v59_v22 }
  0x1d   :  { %v61_v24 = vmul.f32 0.5, %v60_v23  ;;  %v92_v41 = vmul.f32 2.0, %v60_v23 }
  0x1f   :  { %v63_v25 = vrot.slane %v61_v24, 5  ;;  %v93_v43 = vadd.f32 %v92_v41, %v38_v14  ;;  %v270_v24 = vmov 683565275  }
  0x21   :  { %v65_v26 = vadd.f32 %v63_v25, %v302_v2  ;;  %v264_v61 = vpop.eup %263 }
  0x22   :  { %v20_v63 = vmul.f32 0.6931472, %v264_v61 }
  0x23   :  { %v67_v27 = vrot.slane %v65_v26, 3  ;;  %v271_v26 = vmov 2475754826  }
  0x24   :  { %v26_v4 = vsel %vm25_vm3, %v23_v0, %v20_v63 }
  0x25   :  { %v69_v28 = vsub.f32 %v54_v19, %v67_v27  ;;  %v28_v5 = vadd.f32 %v27_v1, %v26_v4 }
  0x27   :  { %v70_v30 = vmul.f32 100.0, %v69_v28  ;;  %v104_v7 = vmul.f32 6.2831855, %v28_v5  ;;  %v118_v11 = vrot.slane %v28_v5, %v117_v9 }
  0x29   :  { %v71_v32 = vmul.f32 0.001, %v70_v30  ;;  %v108_v10 = vrot.slane %v104_v7, %v107_v8 }
  0x2b   :  { %v78_v34 = vrot.slane %v71_v32, 5  ;;  %v94_v44 = vmul.f32 2.0, %v71_v32  ;;  %v273_v32 = vmov 2102212464  }
  0x2d   :  { %v80_v36 = vadd.f32 %v78_v34, %v302_v2  ;;  %v95_v47 = vadd.f32 %v94_v44, %v93_v43 }
  0x2f   :  { %v87_v39 = vrot.slane %v80_v36, 3  ;;  %v274_v36 = vmov 920167782  }
  0x31   :  { %v89_v40 = vsub.f32 %v85_v38, %v87_v39  ;;  %v275_v39 = vmov 1326507024  }
  0x33   :  { %v90_v42 = vmul.f32 100.0, %v89_v40 }
  0x35   :  { %v91_v46 = vmul.f32 0.001, %v90_v42 }
  0x37   :  { %v96_v49 = vadd.f32 %v95_v47, %v91_v46 }
  0x39   :  { %v98_v51 = vmul.f32 0.16666667, %v96_v49 }
  0x3b   :  { %v100_v52 = vrot.slane %v98_v51, 5 }
  0x3d   :  { %v102_v53 = vadd.f32 %v100_v52, %v302_v2 }
  0x3f   :  { %v233_v55 = vsel %vm232_vm1, %v231_v54, %v102_v53 }
  0x40   :  { %v235_v56 = vsel %vm234_vm2, %v233_v55, %v302_v2 }
  0x41   :  { %236 = vst [vmem:[%s360_s3] sm:$0xff] %v235_v56 }
  0x81   :  { %v112_v12 = vpop.permute.xlu0 %111 }
  0x82   :  { %v114_v13 = vmul.f32 %v112_v12, %v108_v10 }
  0x84   :  { %v332_v14 = vadd.f32 %v118_v11, %v114_v13 }
  0x86   :  { %v123_v15 = vand.u32 2139095040, %v332_v14  ;;  %v120_v18 = vand.u32 2147483647, %v332_v14  ;;  %vm122_vm11 = vcmp.lt.s32.totalorder %v332_v14, 0  ;;  %vm212_vm0 = vweird.f32 %v332_v14 }
  0x88   :  { %v124_v16 = vshrl.u32 %v123_v15, 23  ;;  %v127_v21 = vand.u32 8388607, %v120_v18  ;;  %vm121_vm12 = vcmp.le.f32.partialorder %v120_v18, 0.7853982 }
  0x8a   :  { %v245_v2 = vadd.s32 4294967169, %v124_v16  ;;  %v128_v41 = vor.u32 8388608, %v127_v21 }
  0x8c   :  { %v130_v17 = vadd.s32 1, %v245_v2  ;;  %v168_v55 = vshll.u32 %v128_v41, 8 }
  0x8e   :  { %vm131_vm4 = vcmp.gt.s32.totalorder %v130_v17, 0 }
  0x8f   :  { %v132_v19 = vsel %vm131_vm4, %v130_v17, 0 }
  0x90   :  { %v134_v20 = vand.u32 31, %v132_v19  ;;  %v133_v23 = vshrl.u32 %v132_v19, 5 }
  0x92   :  { %v135_v22 = vsub.s32 32, %v134_v20  ;;  %v137_v25 = vshll.u32 %v270_v24, %v134_v20  ;;  %v140_v27 = vshll.u32 %v271_v26, %v134_v20  ;;  %v143_v31 = vshll.u32 %v272_v29, %v134_v20 }
  0x93   :  { %v146_v35 = vshll.u32 %v273_v32, %v134_v20  ;;  %v149_v38 = vshll.u32 %v274_v36, %v134_v20  ;;  %vm152_vm5 = vcmp.lt.s32.totalorder %v133_v23, 1  ;;  %vm155_vm6 = vcmp.lt.s32.totalorder %v133_v23, 4 }
  0x94   :  { %v138_v28 = vshrl.u32 %v271_v26, %v135_v22  ;;  %v141_v30 = vshrl.u32 %v272_v29, %v135_v22  ;;  %v144_v34 = vshrl.u32 %v273_v32, %v135_v22  ;;  %v147_v37 = vshrl.u32 %v274_v36, %v135_v22 }
  0x95   :  { %v150_v40 = vshrl.u32 %v275_v39, %v135_v22  ;;  %v136_v50 = vshrl.u32 %v270_v24, %v135_v22  ;;  %vm154_vm7 = vcmp.lt.s32.totalorder %v133_v23, 3  ;;  %vm153_vm8 = vcmp.lt.s32.totalorder %v133_v23, 2 }
  0x96   :  { %v139_v42 = vor.u32 %v138_v28, %v137_v25  ;;  %v142_v43 = vor.u32 %v141_v30, %v140_v27  ;;  %v145_v44 = vor.u32 %v144_v34, %v143_v31  ;;  %v148_v45 = vor.u32 %v147_v37, %v146_v35 }
  0x97   :  { %v151_v46 = vor.u32 %v150_v40, %v149_v38  ;;  %v226_v38 = vsub.s32 3, %v328_v6 }
  0x98   :  { %v157_v47 = vsel %vm155_vm6, %v145_v44, 2102212464  ;;  %v160_v48 = vsel %vm152_vm5, %v139_v42, %v142_v43  ;;  %v164_v49 = vsel %vm152_vm5, %v142_v43, %v145_v44  ;;  %v161_v51 = vsel %vm155_vm6, %v148_v45, 920167782 }
  0x99   :  { %v165_v52 = vsel %vm155_vm6, %v151_v46, 1326507024  ;;  %v162_v53 = vsel %vm154_vm7, %v145_v44, %v161_v51  ;;  %v156_v56 = vsel %vm152_vm5, %v136_v50, %v139_v42  ;;  %v158_v57 = vsel %vm154_vm7, %v142_v43, %v157_v47 }
  0x9a   :  { %v166_v54 = vsel %vm154_vm7, %v148_v45, %v165_v52  ;;  %v163_v58 = vsel %vm153_vm8, %v160_v48, %v162_v53  ;;  %v159_v0 = vsel %vm153_vm8, %v156_v56, %v158_v57  ;;  %v227_v18 = vrot.slane %v314_v33, %v226_v38 }
  0x9b   :  { %v167_v59 = vsel %vm153_vm8, %v164_v49, %v166_v54  ;;  %v341_v62 = vmul.u32.u64.low %v168_v55, %v163_v58  ;;  %v342_v63 = vmul.u32.u64.high %v168_v55, %v163_v58, %v341_v62  ;;  %v175_v3 = vmul.u32 %v168_v55, %v159_v0 }
  0x9c   :  { %v338_v60 = vmul.u32.u64.low %v168_v55, %v167_v59  ;;  %v339_v61 = vmul.u32.u64.high %v168_v55, %v167_v59, %v338_v60 }
  0x9d   :  { %v178_v1 = vadd.s32 1, %v342_v63 }
  0x9e   :  { %vm177_vm9 = vc.u32 %v339_v61, %v341_v62  ;;  %v176_v2 = vadd.s32 %v341_v62, %v339_v61 }
  0x9f   :  { %v179_v4 = vsel %vm177_vm9, %v178_v1, %v342_v63 }
  0xa0   :  { %v180_v5 = vadd.s32 %v179_v4, %v175_v3 }
  0xa2   :  { %v181_v7 = vadd.s32 536870912, %v180_v5 }
  0xa4   :  { %v182_v8 = vshrl.u32 %v181_v7, 30 }
  0xa6   :  { %v183_v9 = vshll.u32 %v182_v8, 30  ;;  %v206_v29 = vsub.s32 4, %v182_v8 }
  0xa8   :  { %v184_v10 = vsub.s32 %v180_v5, %v183_v9  ;;  %v207_v32 = vsel %vm122_vm11, %v206_v29, %v182_v8 }
  0xa9   :  { %v209_v35 = vsel %vm121_vm12, 0, %v207_v32 }
  0xaa   :  { %v186_v11 = vsub.s32 0, %v184_v10  ;;  %v213_v36 = vadd.s32 3, %v209_v35 }
  0xac   :  { %v246_v12 = vmin.u32 %v186_v11, %v184_v10  ;;  %v214_v37 = vand.u32 3, %v213_v36 }
  0xae   :  { %v188_v13 = vclz %v246_v12  ;;  %vm219_vm13 = vcmp.eq.s32.totalorder %v214_v37, 2  ;;  %vm216_vm14 = vcmp.eq.s32.totalorder %v214_v37, 0  ;;  %vm215_vm15 = vcmp.lt.s32.totalorder %v214_v37, 2 }
  0xb0   :  { %v247_v15 = vadd.s32 4294967294, %v188_v13 }
  0xb2   :  { %vm248_vm10 = vcmp.lt.s32.totalorder %v247_v15, 0 }
  0xb3   :  { %v191_v16 = vsel %vm248_vm10, 0, %v247_v15 }
  0xb4   :  { %v192_v17 = vsub.s32 32, %v191_v16  ;;  %v196_v19 = vsub.s32 4294967266, %v191_v16  ;;  %v193_v20 = vshll.u32 %v184_v10, %v191_v16 }
  0xb6   :  { %v194_v21 = vshrl.u32 %v176_v2, %v192_v17  ;;  %v197_v22 = vadd.s32 127, %v196_v19 }
  0xb8   :  { %v195_v23 = vor.u32 %v194_v21, %v193_v20  ;;  %v198_v24 = vshll.u32 %v197_v22, 23 }
  0xba   :  { %v199_v25 = vor.u32 4788187, %v198_v24  ;;  %v202_v27 = vcvt.s32.f32 %v195_v23 }
  0xbc   :  { %v200_v26 = vand.u32 2147483647, %v199_v25 }
  0xbe   :  { %v203_v28 = vmul.f32 %v202_v27, %v200_v26 }
  0xc0   :  { %v204_v30 = vxor.u32 2147483648, %v203_v28 }
  0xc2   :  { %v205_v31 = vsel %vm122_vm11, %v204_v30, %v203_v28 }
  0xc3   :  { %v208_v34 = vsel %vm121_vm12, %v332_v14, %v205_v31 }
  0xc4   :  { %265 = vcosq.f32 %v208_v34 }
  0xc5   :  { %267 = vsinq.f32 %v208_v34 }
  0xce   :  { %v266_v39 = vpop.eup %265 }
  0xcf   :  { %v268_v40 = vpop.eup %267  ;;  %v220_v41 = vxor.u32 2147483648, %v266_v39 }
  0xd0   :  { %v217_v42 = vxor.u32 2147483648, %v268_v40 }
  0xd1   :  { %v221_v43 = vsel %vm219_vm13, %v220_v41, %v268_v40 }
  0xd2   :  { %v218_v44 = vsel %vm216_vm14, %v266_v39, %v217_v42 }
  0xd3   :  { %v222_v45 = vsel %vm215_vm15, %v218_v44, %v221_v43 }
  0xd4   :  { %v223_v46 = vsel %vm212_vm0, nan, %v222_v45 }
  0xd5   :  { %v228_v47 = vmul.f32 %v227_v18, %v223_v46 }
  0xd7   :  { %229 = vst [vmem:[%s361_s2] sm:$0xff] %v228_v47 }

</bundles_post_ra>
